<compile_context>
chip_gen: v7x
topology: tpu7x:2x2x1
jax: 0.10.0
libtpu: 0.0.40
codegen_flags: <defaults>
</compile_context>

<pallas_src>
import math
import numpy as np
import jax
import jax.numpy as jnp
from jax.experimental import pallas as pl
from jax.experimental.pallas import tpu as pltpu


# ----------------------------- static pad math -----------------------------

def _to_2tuple(v):
    if isinstance(v, (tuple, list)):
        assert len(v) == 2
        return tuple(v)
    return (v, v)


def _reflect_tf(x, minx, maxx):
    """TF-style 'symmetric' reflection (same as symm_pad's reflect)."""
    x = np.asarray(x, dtype=np.float64)
    rng = maxx - minx
    double_rng = 2 * rng
    mod = np.fmod(x - minx, double_rng)
    normed_mod = np.where(mod < 0, mod + double_rng, mod)
    out = np.where(normed_mod >= rng, double_rng - normed_mod, normed_mod) + minx
    return out.astype(np.int64)


def _exact_pad_amounts(h, w, kernel, stride, dilation):
    kh, kw = kernel
    sh, sw = stride
    dh, dw = dilation
    h2 = math.ceil(h / sh)
    w2 = math.ceil(w / sw)
    pad_row = (h2 - 1) * sh + (kh - 1) * dh + 1 - h
    pad_col = (w2 - 1) * sw + (kw - 1) * dw + 1 - w
    assert pad_row >= 0 and pad_col >= 0, "negative (crop) padding not supported"
    pad_l, pad_r = pad_col // 2, pad_col - pad_col // 2
    pad_t, pad_b = pad_row // 2, pad_row - pad_row // 2
    return pad_l, pad_r, pad_t, pad_b


def _index_map_1d(size, pad_before, pad_after, mode):
    """(indices, valid) for one spatial axis of the padded output."""
    pos = np.arange(-pad_before, size + pad_after)
    if mode in ("same", "constant"):
        idx = np.clip(pos, 0, size - 1)
        valid = (pos >= 0) & (pos < size)
    elif mode == "replicate":
        idx = np.clip(pos, 0, size - 1)
        valid = np.ones_like(pos, dtype=bool)
    elif mode == "circular":
        idx = np.mod(pos, size)
        valid = np.ones_like(pos, dtype=bool)
    elif mode == "symmetric":
        idx = _reflect_tf(pos, -0.5, size - 0.5)
        valid = np.ones_like(pos, dtype=bool)
    else:
        raise ValueError(f"unsupported mode: {mode}")
    return idx.astype(np.int64), valid


def _axis_pieces(idx, valid):
    """Group the static output->source index map into pieces:
       ('zero', 0, n)   -> n zero rows/cols
       ('slice', a, n)  -> source[a : a+n]      (contiguous ascending run)
       ('repeat', a, n) -> source[a] repeated n times
    Anything else degenerates into length-1 slices (e.g. reversed symmetric
    border rows), which is cheap for the small pad sizes involved."""
    pieces = []
    n = len(idx)
    i = 0
    while i < n:
        if not valid[i]:
            j = i
            while j < n and not valid[j]:
                j += 1
            pieces.append(("zero", 0, j - i))
            i = j
            continue
        # contiguous ascending run
        j = i + 1
        while j < n and valid[j] and idx[j] == idx[j - 1] + 1:
            j += 1
        if j - i >= 2:
            pieces.append(("slice", int(idx[i]), j - i))
            i = j
            continue
        # constant (repeat) run
        j = i + 1
        while j < n and valid[j] and idx[j] == idx[i]:
            j += 1
        if j - i >= 2:
            pieces.append(("repeat", int(idx[i]), j - i))
            i = j
            continue
        pieces.append(("slice", int(idx[i]), 1))
        i += 1
    return pieces


# ------------------------------ Pallas kernels -------------------------------

def _make_pad_kernel(mode, h_pieces, w_pieces, h, w, h_out, w_out, pads):
    """Kernel over a (C_b, H, W) input block -> (C_b, H_out, W_out) output
    block.  Pure copies / zero fills in the input dtype; no MXU, no casts."""
    pad_l, pad_r, pad_t, pad_b = pads

    # Trivial case: no padding at all -> straight copy.
    if pad_l == 0 and pad_r == 0 and pad_t == 0 and pad_b == 0:
        def copy_kernel(x_ref, o_ref):
            o_ref[...] = x_ref[...]
        return copy_kernel

    if mode in ("same", "constant"):
        # Zero padding: zero-fill the whole output block once, then a single
        # interior store.  No concatenates at all.
        def const_kernel(x_ref, o_ref):
            o_ref[...] = jnp.zeros(o_ref.shape, o_ref.dtype)
            o_ref[:, pad_t:pad_t + h, pad_l:pad_l + w] = x_ref[...]
        return const_kernel

    # replicate / circular / symmetric: no zero pieces by construction.
    def kernel(x_ref, o_ref):
        x = x_ref[...]                       # (C_b, H, W), input dtype
        cb = x.shape[0]

        # ---- pad along W (lane axis) ----
        w_parts = []
        for kind, a, ln in w_pieces:
            if kind == "slice":
                w_parts.append(x[:, :, a:a + ln])
            else:  # repeat (edge replication)
                w_parts.append(jnp.broadcast_to(x[:, :, a:a + 1], (cb, h, ln)))
        xw = w_parts[0] if len(w_parts) == 1 else jnp.concatenate(w_parts, axis=2)

        # ---- pad along H (sublane axis) ----
        h_parts = []
        for kind, a, ln in h_pieces:
            if kind == "slice":
                h_parts.append(xw[:, a:a + ln, :])
            else:  # repeat
                h_parts.append(jnp.broadcast_to(xw[:, a:a + 1, :], (cb, ln, w_out)))
        out = h_parts[0] if len(h_parts) == 1 else jnp.concatenate(h_parts, axis=1)

        o_ref[...] = out                     # single lane-dense full-block store

    return kernel


def exact_padding_2d_pallas(x, kernel, stride=1, dilation=1, mode="same"):
    """Pallas implementation of ExactPadding2d.forward for NCHW input."""
    if mode is None:
        return x
    assert x.ndim == 4, f"Only support 4D tensor input, but got {x.shape}"
    kernel = _to_2tuple(kernel)
    stride = _to_2tuple(stride)
    dilation = _to_2tuple(dilation)

    n, c, h, w = x.shape
    pads = _exact_pad_amounts(h, w, kernel, stride, dilation)
    pad_l, pad_r, pad_t, pad_b = pads
    h_out = h + pad_t + pad_b
    w_out = w + pad_l + pad_r

    y_idx, y_valid = _index_map_1d(h, pad_t, pad_b, mode)
    x_idx, x_valid = _index_map_1d(w, pad_l, pad_r, mode)
    h_pieces = _axis_pieces(y_idx, y_valid)
    w_pieces = _axis_pieces(x_idx, x_valid)

    # Collapse (N, C) -> NC and block it.  Free reshape (contiguous layout).
    nc = n * c
    xr = x.reshape(nc, h, w)

    # Channel-block size: fit comfortably in VMEM (Pallas double-buffers each
    # in/out block).  Only force >=2 grid steps (for megacore / 2-TC sharding
    # on v7x) when the problem is large enough to amortize the ~0.35 us
    # per-step pipeline overhead; tiny inputs run as a single grid step.
    itemsize = np.dtype(x.dtype).itemsize
    per_chan_bytes = (h * w + h_out * w_out) * itemsize
    vmem_budget = 4 << 20                                   # per stage (in+out)
    cb_cap = max(1, vmem_budget // max(1, per_chan_bytes))
    total_bytes = nc * per_chan_bytes
    if nc >= 2 and total_bytes >= (1 << 20):
        cb_cap = min(cb_cap, (nc + 1) // 2)
    c_b = 1
    for d in range(1, nc + 1):                              # largest divisor <= cap
        if nc % d == 0 and d <= cb_cap:
            c_b = d
    num_blocks = nc // c_b

    pad_kernel_fn = _make_pad_kernel(mode, h_pieces, w_pieces,
                                     h, w, h_out, w_out, pads)

    out = pl.pallas_call(
        pad_kernel_fn,
        out_shape=jax.ShapeDtypeStruct((nc, h_out, w_out), x.dtype),
        grid_spec=pltpu.PrefetchScalarGridSpec(
            num_scalar_prefetch=0,
            grid=(num_blocks,),
            in_specs=[pl.BlockSpec((c_b, h, w), lambda i: (i, 0, 0))],
            out_specs=pl.BlockSpec((c_b, h_out, w_out), lambda i: (i, 0, 0)),
        ),
        compiler_params=pltpu.CompilerParams(
            dimension_semantics=("parallel",)),
    )(xr)
    return out.reshape(n, c, h_out, w_out)


class ExactPadding2dPallas:
    """Mirror of the PyTorch ExactPadding2d module (no learned parameters)."""

    def __init__(self, kernel, stride=1, dilation=1, mode="same"):
        self.kernel = _to_2tuple(kernel)
        self.stride = _to_2tuple(stride)
        self.dilation = _to_2tuple(dilation)
        self.mode = mode

    def __call__(self, x):
        if self.mode is None:
            return x
        return exact_padding_2d_pallas(x, self.kernel, self.stride,
                                       self.dilation, self.mode)


# -------------------------------- reference ---------------------------------

def _reference_numpy(x, kernel, stride, dilation, mode):
    x = np.asarray(x)
    n, c, h, w = x.shape
    pad_l, pad_r, pad_t, pad_b = _exact_pad_amounts(
        h, w, _to_2tuple(kernel), _to_2tuple(stride), _to_2tuple(dilation))
    y_idx, y_valid = _index_map_1d(h, pad_t, pad_b, mode)
    x_idx, x_valid = _index_map_1d(w, pad_l, pad_r, mode)
    out = x[:, :, y_idx[:, None], x_idx[None, :]]
    mask = (y_valid[:, None] & x_valid[None, :])
    return out * mask.astype(x.dtype)


# ----------------------------------- main ------------------------------------

if __name__ == "__main__":
    key = jax.random.PRNGKey(0)
    x = jax.random.normal(key, (2, 4, 16, 16), dtype=jnp.float32)

    ok = True
    for mode in ("same", "symmetric", "replicate", "circular"):
        mod = ExactPadding2dPallas(kernel=11, stride=1, dilation=1, mode=mode)
        y = jax.block_until_ready(mod(x))
        ref = _reference_numpy(np.asarray(x), 11, 1, 1, mode)
        if y.shape != ref.shape or not np.allclose(np.asarray(y), ref, atol=1e-6):
            ok = False
            print(f"MISMATCH in mode={mode}")

    # stride > 1 case (different pad split), 'same' mode
    mod_s = ExactPadding2dPallas(kernel=3, stride=2, dilation=1, mode="same")
    y_s = jax.block_until_ready(mod_s(x))
    ref_s = _reference_numpy(np.asarray(x), 3, 2, 1, "same")
    if y_s.shape != ref_s.shape or not np.allclose(np.asarray(y_s), ref_s, atol=1e-6):
        ok = False
        print("MISMATCH in strided 'same' case")

    # mode=None passthrough
    y_none = jax.block_until_ready(ExactPadding2dPallas(kernel=11, mode=None)(x))
    ok = ok and bool(jnp.all(y_none == x))

    if ok:
        print("KERNEL_OK")
</pallas_src>

<mosaic_0001>
module attributes {stable_mosaic.version = 11 : i64} {
  func.func @const_kernel(%arg0: i32, %arg1: memref<8x16x16xf32, #tpu.memory_space<vmem>>, %arg2: memref<8x26x26xf32, #tpu.memory_space<vmem>>) attributes {dimension_semantics = [#tpu.dimension_semantics<parallel>], iteration_bounds = array<i64: 1>, scalar_prefetch = 0 : i64, scratch_operands = 0 : i64, tpu.core_type = #tpu.core_type<tc>, window_params = [{transform_indices = @transform_0, window_bounds = array<i64: 8, 16, 16>}, {transform_indices = @transform_1, window_bounds = array<i64: 8, 26, 26>}]} {
    %cst = arith.constant 0.000000e+00 : f32
    %0 = vector.broadcast %cst : f32 to vector<8x26x26xf32>
    %c0 = arith.constant 0 : index
    %c0_0 = arith.constant 0 : index
    %c0_1 = arith.constant 0 : index
    %1 = vector.load %arg2[%c0, %c0_0, %c0_1] : memref<8x26x26xf32, #tpu.memory_space<vmem>>, vector<8x26x26xf32>
    tpu.vector_store %arg2[%c0, %c0_0, %c0_1], %0 {strides = array<i32>} : memref<8x26x26xf32, #tpu.memory_space<vmem>>, vector<8x26x26xf32>,
    %c0_2 = arith.constant 0 : index
    %c0_3 = arith.constant 0 : index
    %c0_4 = arith.constant 0 : index
    %2 = vector.load %arg1[%c0_2, %c0_3, %c0_4] : memref<8x16x16xf32, #tpu.memory_space<vmem>>, vector<8x16x16xf32>
    %c0_5 = arith.constant 0 : index
    %c5 = arith.constant 5 : index
    %c5_6 = arith.constant 5 : index
    %3 = vector.load %arg2[%c0_5, %c5, %c5_6] : memref<8x26x26xf32, #tpu.memory_space<vmem>>, vector<8x16x16xf32>
    tpu.vector_store %arg2[%c0_5, %c5, %c5_6], %2 {strides = array<i32>} : memref<8x26x26xf32, #tpu.memory_space<vmem>>, vector<8x16x16xf32>,
    return
  }
  func.func @transform_0(%arg0: i32) -> (i32, i32, i32) {
    %c0_i32 = arith.constant 0 : i32
    %c0_i32_0 = arith.constant 0 : i32
    %c0_i32_1 = arith.constant 0 : i32
    return %arg0, %c0_i32, %c0_i32_0 : i32, i32, i32
  }
  func.func @transform_1(%arg0: i32) -> (i32, i32, i32) {
    %c0_i32 = arith.constant 0 : i32
    %c0_i32_0 = arith.constant 0 : i32
    %c0_i32_1 = arith.constant 0 : i32
    return %arg0, %c0_i32, %c0_i32_0 : i32, i32, i32
  }
}

</mosaic_0001>

<bundles_post_ra>
// kernel: tpu_custom_call.1
= control target key start
LH: loop header
LB: loop body
LE: loop exit
PB: predicated region body
PF: predicated region fallthrough
CT: control target
= control target key end

     0   :  { %6 = vsyncpa [#allocation3], 0  ;;  %s187_s6 = smov [#allocation2]   ;;  %s398_s0 = inlined_call_operand.hbm [shape: f32[8,16,16], index: 0, kind: input, shape index: {}]   ;;  %s399_s1 = inlined_call_operand.vmem [shape: f32[8,26,26], index: 1, kind: output, shape index: {}]  }
   0x1   :  { %s12_s7 = sshll.u32 %s187_s6, 4  ;;  %s163_s10 = scalar_lea.hbm %s398_s0, 2048  ;;  %s13_s7 = int_to_ptr.vmem [resolvable:$true] %s12_s7 }
   0x2   :  { %p164_p0 = scmp.ne.s32.totalorder %s398_s0, %s163_s10  ;;  %p167_p1 = scmp.lt.u32.totalorder %s163_s10, %s398_s0 }
   0x4   :  { %p169_p2 = pnand %p167_p1, %p164_p0 }
   0x6   :  { %172 = shalt.err (!%p169_p2)
}
   0x7   :  { %s173_s15 = scalar_lea.vmem %s13_s7, 2048  ;;  %p178_p4 = scmp.lt.s32.totalorder %s13_s7, %s13_s7 }
   0x8   :  { %p174_p3 = scmp.ne.s32.totalorder %s13_s7, %s173_s15  ;;  %p179_p5 = scmp.lt.s32.totalorder %s173_s15, %s173_s15 }
   0xa   :  { %p180_p6 = por %p179_p5, %p178_p4 }
   0xc   :  { %p181_p7 = pnand %p180_p6, %p174_p3 }
   0xe   :  { %184 = shalt.err (!%p181_p7)
}
   0xf   :  { %s188_s16 = smov 128   ;;  %s189_s17 = smov 8  }
  0x10   :  { %18 = dma.hbm_to_vmem [thread:$0]  %s398_s0, 2048, %s13_s7, [#allocation3], %s188_s16, %s188_s16, %s189_s17  }
  0x11   :  { %185 = dma.done.wait [#allocation3], 2048  }
  0x12   :  { %186 = vsyncadd [#allocation3], 4294965248  ;;  %vm22_vm0 = vcmask 211968   ;;  %vm26_vm1 = vcmask 205824   ;;  %v190_v0 = vmov 0.0   ;;  %v58_v1 = vld [vmem:[#allocation2 + $0x10] sm:$0xff] }
  0x13   :  { %27 = vst.msk [vmem:[%s399_s1 + $0x18] sm:$0x3] %vm26_vm1, %v190_v0  ;;  %31 = vst.msk [vmem:[%s399_s1 + $0x38] sm:$0x3] %vm26_vm1, %v190_v0  ;;  %v56_v2 = vld [vmem:[#allocation2] sm:$0xff]  ;;  %s191_s24 = smov 5  }
  0x14   :  { %28 = vst.msk [vmem:[%s399_s1 + $0x20] sm:$0xff] %vm22_vm0, %v190_v0  ;;  %29 = vst.msk [vmem:[%s399_s1 + $0x28] sm:$0xff] %vm22_vm0, %v190_v0  ;;  %92 = vrot.lane.b32.xlu1 %v58_v1, %s191_s24  ;;  %88 = vrot.lane.b32.xlu0 %v56_v2, %s191_s24  ;;  %v59_v3 = vld [vmem:[#allocation2 + $0x18] sm:$0xff]  ;;  %v57_v4 = vld [vmem:[#allocation2 + $0x8] sm:$0xff]  ;;  %vm136_vm2 = vcmask 171048  }
  0x15   :  { %35 = vst.msk [vmem:[%s399_s1 + $0x58] sm:$0x3] %vm26_vm1, %v190_v0  ;;  %39 = vst.msk [vmem:[%s399_s1 + $0x78] sm:$0x3] %vm26_vm1, %v190_v0  ;;  %v61_v5 = vld [vmem:[#allocation2 + $0x28] sm:$0xff]  ;;  %v60_v6 = vld [vmem:[#allocation2 + $0x20] sm:$0xff] }
  0x16   :  { %43 = vst.msk [vmem:[%s399_s1 + $0x98] sm:$0x3] %vm26_vm1, %v190_v0  ;;  %47 = vst.msk [vmem:[%s399_s1 + $0xb8] sm:$0x3] %vm26_vm1, %v190_v0  ;;  %v63_v7 = vld [vmem:[#allocation2 + $0x38] sm:$0xff]  ;;  %v62_v8 = vld [vmem:[#allocation2 + $0x30] sm:$0xff] }
  0x17   :  { %51 = vst.msk [vmem:[%s399_s1 + $0xd8] sm:$0x3] %vm26_vm1, %v190_v0  ;;  %55 = vst.msk [vmem:[%s399_s1 + $0xf8] sm:$0x3] %vm26_vm1, %v190_v0  ;;  %v65_v9 = vld [vmem:[#allocation2 + $0x48] sm:$0xff]  ;;  %v64_v10 = vld [vmem:[#allocation2 + $0x40] sm:$0xff] }
  0x18   :  { %23 = vst.msk [vmem:[%s399_s1] sm:$0xff] %vm22_vm0, %v190_v0  ;;  %24 = vst.msk [vmem:[%s399_s1 + $0x8] sm:$0xff] %vm22_vm0, %v190_v0  ;;  %94 = vrot.lane.b32.xlu1 %v59_v3, %s191_s24  ;;  %90 = vrot.lane.b32.xlu0 %v57_v4, %s191_s24  ;;  %v67_v11 = vld [vmem:[#allocation2 + $0x58] sm:$0xff]  ;;  %v66_v12 = vld [vmem:[#allocation2 + $0x50] sm:$0xff] }
  0x19   :  { %25 = vst.msk [vmem:[%s399_s1 + $0x10] sm:$0xff] %vm22_vm0, %v190_v0  ;;  %30 = vst.msk [vmem:[%s399_s1 + $0x30] sm:$0xff] %vm22_vm0, %v190_v0  ;;  %v69_v13 = vld [vmem:[#allocation2 + $0x68] sm:$0xff]  ;;  %v68_v14 = vld [vmem:[#allocation2 + $0x60] sm:$0xff] }
  0x1a   :  { %32 = vst.msk [vmem:[%s399_s1 + $0x40] sm:$0xff] %vm22_vm0, %v190_v0  ;;  %33 = vst.msk [vmem:[%s399_s1 + $0x48] sm:$0xff] %vm22_vm0, %v190_v0  ;;  %v71_v15 = vld [vmem:[#allocation2 + $0x78] sm:$0xff]  ;;  %v70_v16 = vld [vmem:[#allocation2 + $0x70] sm:$0xff] }
  0x1b   :  { %34 = vst.msk [vmem:[%s399_s1 + $0x50] sm:$0xff] %vm22_vm0, %v190_v0  ;;  %36 = vst.msk [vmem:[%s399_s1 + $0x60] sm:$0xff] %vm22_vm0, %v190_v0 }
  0x1c   :  { %37 = vst.msk [vmem:[%s399_s1 + $0x68] sm:$0xff] %vm22_vm0, %v190_v0  ;;  %38 = vst.msk [vmem:[%s399_s1 + $0x70] sm:$0xff] %vm22_vm0, %v190_v0  ;;  %98 = vrot.lane.b32.xlu1 %v61_v5, %s191_s24  ;;  %96 = vrot.lane.b32.xlu0 %v60_v6, %s191_s24 }
  0x1d   :  { %40 = vst.msk [vmem:[%s399_s1 + $0x80] sm:$0xff] %vm22_vm0, %v190_v0  ;;  %41 = vst.msk [vmem:[%s399_s1 + $0x88] sm:$0xff] %vm22_vm0, %v190_v0 }
  0x1e   :  { %42 = vst.msk [vmem:[%s399_s1 + $0x90] sm:$0xff] %vm22_vm0, %v190_v0  ;;  %44 = vst.msk [vmem:[%s399_s1 + $0xa0] sm:$0xff] %vm22_vm0, %v190_v0 }
  0x1f   :  { %45 = vst.msk [vmem:[%s399_s1 + $0xa8] sm:$0xff] %vm22_vm0, %v190_v0  ;;  %46 = vst.msk [vmem:[%s399_s1 + $0xb0] sm:$0xff] %vm22_vm0, %v190_v0 }
  0x20   :  { %48 = vst.msk [vmem:[%s399_s1 + $0xc0] sm:$0xff] %vm22_vm0, %v190_v0  ;;  %49 = vst.msk [vmem:[%s399_s1 + $0xc8] sm:$0xff] %vm22_vm0, %v190_v0  ;;  %102 = vrot.lane.b32.xlu1 %v63_v7, %s191_s24  ;;  %100 = vrot.lane.b32.xlu0 %v62_v8, %s191_s24 }
  0x21   :  { %50 = vst.msk [vmem:[%s399_s1 + $0xd0] sm:$0xff] %vm22_vm0, %v190_v0  ;;  %52 = vst.msk [vmem:[%s399_s1 + $0xe0] sm:$0xff] %vm22_vm0, %v190_v0 }
  0x22   :  { %53 = vst.msk [vmem:[%s399_s1 + $0xe8] sm:$0xff] %vm22_vm0, %v190_v0  ;;  %54 = vst.msk [vmem:[%s399_s1 + $0xf0] sm:$0xff] %vm22_vm0, %v190_v0 }
  0x24   :  { %106 = vrot.lane.b32.xlu1 %v65_v9, %s191_s24  ;;  %104 = vrot.lane.b32.xlu0 %v64_v10, %s191_s24 }
  0x28   :  { %110 = vrot.lane.b32.xlu1 %v67_v11, %s191_s24  ;;  %108 = vrot.lane.b32.xlu0 %v66_v12, %s191_s24 }
  0x2c   :  { %114 = vrot.lane.b32.xlu1 %v69_v13, %s191_s24  ;;  %112 = vrot.lane.b32.xlu0 %v68_v14, %s191_s24 }
  0x30   :  { %118 = vrot.lane.b32.xlu1 %v71_v15, %s191_s24  ;;  %116 = vrot.lane.b32.xlu0 %v70_v16, %s191_s24 }
  0x86   :  { %v93_v17 = vpop.permute.xlu1 %92  ;;  %v89_v18 = vpop.permute.xlu0 %88 }
  0x87   :  { %139 = vst.msk [vmem:[%s399_s1 + $0x25] sm:$0xff] %vm136_vm2, %v93_v17  ;;  %137 = vst.msk [vmem:[%s399_s1 + $0x5] sm:$0xff] %vm136_vm2, %v89_v18 }
  0x8a   :  { %v95_v19 = vpop.permute.xlu1 %94  ;;  %v91_v20 = vpop.permute.xlu0 %90 }
  0x8b   :  { %140 = vst.msk [vmem:[%s399_s1 + $0x2d] sm:$0xff] %vm136_vm2, %v95_v19  ;;  %138 = vst.msk [vmem:[%s399_s1 + $0xd] sm:$0xff] %vm136_vm2, %v91_v20 }
  0x8e   :  { %v99_v21 = vpop.permute.xlu1 %98  ;;  %v97_v22 = vpop.permute.xlu0 %96 }
  0x8f   :  { %142 = vst.msk [vmem:[%s399_s1 + $0x4d] sm:$0xff] %vm136_vm2, %v99_v21  ;;  %141 = vst.msk [vmem:[%s399_s1 + $0x45] sm:$0xff] %vm136_vm2, %v97_v22 }
  0x92   :  { %v103_v23 = vpop.permute.xlu1 %102  ;;  %v101_v24 = vpop.permute.xlu0 %100 }
  0x93   :  { %144 = vst.msk [vmem:[%s399_s1 + $0x6d] sm:$0xff] %vm136_vm2, %v103_v23  ;;  %143 = vst.msk [vmem:[%s399_s1 + $0x65] sm:$0xff] %vm136_vm2, %v101_v24 }
  0x96   :  { %v107_v25 = vpop.permute.xlu1 %106  ;;  %v105_v26 = vpop.permute.xlu0 %104 }
  0x97   :  { %146 = vst.msk [vmem:[%s399_s1 + $0x8d] sm:$0xff] %vm136_vm2, %v107_v25  ;;  %145 = vst.msk [vmem:[%s399_s1 + $0x85] sm:$0xff] %vm136_vm2, %v105_v26 }
  0x9a   :  { %v111_v27 = vpop.permute.xlu1 %110  ;;  %v109_v28 = vpop.permute.xlu0 %108 }
  0x9b   :  { %148 = vst.msk [vmem:[%s399_s1 + $0xad] sm:$0xff] %vm136_vm2, %v111_v27  ;;  %147 = vst.msk [vmem:[%s399_s1 + $0xa5] sm:$0xff] %vm136_vm2, %v109_v28 }
  0x9e   :  { %v115_v29 = vpop.permute.xlu1 %114  ;;  %v113_v30 = vpop.permute.xlu0 %112 }
  0x9f   :  { %150 = vst.msk [vmem:[%s399_s1 + $0xcd] sm:$0xff] %vm136_vm2, %v115_v29  ;;  %149 = vst.msk [vmem:[%s399_s1 + $0xc5] sm:$0xff] %vm136_vm2, %v113_v30 }
  0xa2   :  { %v119_v31 = vpop.permute.xlu1 %118  ;;  %v117_v32 = vpop.permute.xlu0 %116 }
  0xa3   :  { %152 = vst.msk [vmem:[%s399_s1 + $0xed] sm:$0xff] %vm136_vm2, %v119_v31  ;;  %151 = vst.msk [vmem:[%s399_s1 + $0xe5] sm:$0xff] %vm136_vm2, %v117_v32 }
  0xa4   :  { %157 = vsyncpa [#allocation3], 1 }

</bundles_post_ra>
